<compile_context>
chip_gen: v7x
topology: tpu7x:2x2x1
jax: 0.10.0
libtpu: 0.0.40
codegen_flags: <defaults>
</compile_context>

<pallas_src>
import functools

import jax
import jax.numpy as jnp
from jax.experimental import pallas as pl
from jax.experimental.pallas import tpu as pltpu

LANE = 128
SUBLANE = 8            # x / out stay f32 in HBM -> 8-row sublane granularity
MAX_BLOCK_B = 4096     # per-step VMEM at 4096 rows is < 10 MiB on all chips


def _round_up(x, m):
    return ((x + m - 1) // m) * m


def dqn_kernel(x_ref, w1_ref, b1_ref, w2_ref, b2_ref, w3_ref, b3_ref, o_ref):
    # x arrives at its real (unpadded) feature width; cast to the compute
    # dtype (bf16 fast path) only here, inside the kernel.
    x = x_ref[...].astype(w1_ref.dtype)
    # fc1 + ReLU (f32 accumulation, f32 bias/activation)
    h1 = jnp.dot(x, w1_ref[...], preferred_element_type=jnp.float32)
    h1 = jnp.maximum(h1 + b1_ref[...], 0.0)
    # fc2 + ReLU
    h2 = jnp.dot(h1.astype(w2_ref.dtype), w2_ref[...],
                 preferred_element_type=jnp.float32)
    h2 = jnp.maximum(h2 + b2_ref[...], 0.0)
    # fc3 (no activation) -- narrow, n_action-wide output
    out = jnp.dot(h2.astype(w3_ref.dtype), w3_ref[...],
                  preferred_element_type=jnp.float32) + b3_ref[...]
    o_ref[...] = out.astype(o_ref.dtype)


def prepare_dqn_params(params, compute_dtype=jnp.bfloat16):
    """Pad / cast the weights ONCE, outside the per-step forward.

    Only the hidden dim is padded to 128 lanes (zero padding keeps the padded
    hidden units exactly 0 after bias+ReLU, so results are unchanged); the
    observation and action dims keep their real widths so x / out HBM traffic
    stays minimal.  Biases stay f32.
    """
    w1, b1, w2, b2, w3, b3 = params
    n_obs, n_hidden = w1.shape
    n_action = w3.shape[1]
    n_hid_p = _round_up(n_hidden, LANE)
    cdt = jnp.dtype(compute_dtype)

    def pad2(a, r, c, dtype):
        return jnp.pad(a, ((0, r - a.shape[0]), (0, c - a.shape[1]))).astype(dtype)

    w1p = pad2(w1, n_obs, n_hid_p, cdt)
    w2p = pad2(w2, n_hid_p, n_hid_p, cdt)
    w3p = pad2(w3, n_hid_p, n_action, cdt)
    b1p = pad2(b1, 1, n_hid_p, jnp.float32)
    b2p = pad2(b2, 1, n_hid_p, jnp.float32)
    b3p = pad2(b3, 1, n_action, jnp.float32)
    return (w1p, b1p, w2p, b2p, w3p, b3p)


def _choose_block_b(batch):
    bp = _round_up(batch, SUBLANE)
    if bp <= SUBLANE:
        return bp
    # Keep >= 2 grid steps so v7x's two TensorCores both get work, capped so
    # per-step VMEM stays small on every generation.
    blk = _round_up(pl.cdiv(bp, 2), SUBLANE)
    return min(MAX_BLOCK_B, blk)


@functools.partial(jax.jit, static_argnames=("block_b",))
def dqn_forward(x, prepared_params, block_b=None):
    w1p, b1p, w2p, b2p, w3p, b3p = prepared_params
    B, n_obs = x.shape
    assert w1p.shape[0] == n_obs, "x feature width must match fc1 fan-in"
    n_hid_p = w1p.shape[1]
    n_action = w3p.shape[1]

    if block_b is None:
        block_b = _choose_block_b(B)
    elif block_b % SUBLANE != 0:
        raise ValueError(f"block_b={block_b} must be a multiple of {SUBLANE}")
    n_blocks = pl.cdiv(B, block_b)
    B_pad = block_b * n_blocks
    if B_pad != B:
        x = jnp.pad(x, ((0, B_pad - B), (0, 0)))   # batch-only padding, no cast

    fixed = lambda i: (0, 0)  # weights / biases: same block every grid step

    flops = 2 * B_pad * (n_obs * n_hid_p + n_hid_p * n_hid_p + n_hid_p * n_action)
    bytes_accessed = (B_pad * n_obs * x.dtype.itemsize
                      + B_pad * n_action * x.dtype.itemsize
                      + sum(int(a.size) * a.dtype.itemsize
                            for a in (w1p, b1p, w2p, b2p, w3p, b3p)))

    out = pl.pallas_call(
        dqn_kernel,
        out_shape=jax.ShapeDtypeStruct((B_pad, n_action), x.dtype),
        grid=(n_blocks,),
        in_specs=[
            # x: real (unpadded) feature width -> minimal HBM read traffic.
            pl.BlockSpec((block_b, n_obs), lambda i: (i, 0)),
            pl.BlockSpec((n_obs, n_hid_p), fixed),
            pl.BlockSpec((1, n_hid_p), fixed),
            pl.BlockSpec((n_hid_p, n_hid_p), fixed),
            pl.BlockSpec((1, n_hid_p), fixed),
            pl.BlockSpec((n_hid_p, n_action), fixed),
            pl.BlockSpec((1, n_action), fixed),
        ],
        # Narrow output block (lane dim == full array dim): no lane padding,
        # ~8x less writeback than a 128-wide padded f32 store.
        out_specs=pl.BlockSpec((block_b, n_action), lambda i: (i, 0)),
        compiler_params=pltpu.CompilerParams(
            dimension_semantics=("parallel",),
            vmem_limit_bytes=32 * 1024 * 1024),
        cost_estimate=pl.CostEstimate(
            flops=flops, transcendentals=0, bytes_accessed=bytes_accessed),
    )(x, w1p, b1p, w2p, b2p, w3p, b3p)

    return out[:B]


def init_dqn_params(key, n_observation, n_hidden, n_action, dtype=jnp.float32):
    """Deterministic init mirroring nn.Linear's U(-1/sqrt(fan_in), 1/sqrt(fan_in)).

    Weights are stored as [in, out] (transposed vs. PyTorch's [out, in])."""
    ks = jax.random.split(key, 6)

    def linear(kw, kb, fan_in, fan_out):
        bound = 1.0 / jnp.sqrt(jnp.asarray(fan_in, jnp.float32))
        w = jax.random.uniform(kw, (fan_in, fan_out), dtype, -bound, bound)
        b = jax.random.uniform(kb, (1, fan_out), dtype, -bound, bound)
        return w, b

    w1, b1 = linear(ks[0], ks[1], n_observation, n_hidden)
    w2, b2 = linear(ks[2], ks[3], n_hidden, n_hidden)
    w3, b3 = linear(ks[4], ks[5], n_hidden, n_action)
    return (w1, b1, w2, b2, w3, b3)


def dqn_reference(x, params):
    w1, b1, w2, b2, w3, b3 = params
    h = jnp.maximum(x @ w1 + b1, 0.0)
    h = jnp.maximum(h @ w2 + b2, 0.0)
    return h @ w3 + b3


if __name__ == "__main__":
    # args.n_channel = 4, args.n_power_level = 4  -> n_observation = n_action = 16
    # args.dqn_n_hidden = 32
    n_channel, n_power_level, n_hidden = 4, 4, 32
    n_observation = n_action = n_channel * n_power_level
    batch = 8

    key = jax.random.PRNGKey(0)
    k_x, k_p, k_big = jax.random.split(key, 3)
    x = jax.random.normal(k_x, (batch, n_observation), jnp.float32)
    params = init_dqn_params(k_p, n_observation, n_hidden, n_action)
    ref = dqn_reference(x, params)

    # Params are padded / cast ONCE (not per forward call).
    params_f32 = prepare_dqn_params(params, compute_dtype=jnp.float32)
    params_bf16 = prepare_dqn_params(params, compute_dtype=jnp.bfloat16)

    # 1) f32 compute path, small batch (single grid step).
    #    Tolerance accounts for the MXU's default f32 matmul precision.
    out_f32 = jax.block_until_ready(dqn_forward(x, params_f32))
    assert out_f32.shape == (batch, n_action)
    assert jnp.allclose(out_f32, ref, atol=1e-3, rtol=1e-3), "f32 mismatch"

    # 2) fast path (bf16 streaming, f32 accumulation), small batch.
    out_bf16 = jax.block_until_ready(dqn_forward(x, params_bf16))
    assert out_bf16.shape == (batch, n_action)
    assert jnp.allclose(out_bf16, ref, atol=5e-2, rtol=5e-2), "bf16 mismatch"

    # 3) larger ragged batch: exercises the 2-step parallel grid + batch padding.
    big_batch = 300
    x_big = jax.random.normal(k_big, (big_batch, n_observation), jnp.float32)
    out_big = jax.block_until_ready(dqn_forward(x_big, params_bf16))
    ref_big = dqn_reference(x_big, params)
    assert out_big.shape == (big_batch, n_action)
    assert jnp.allclose(out_big, ref_big, atol=5e-2, rtol=5e-2), "big-batch mismatch"

    print("KERNEL_OK")
</pallas_src>

<mosaic_0001>
module attributes {stable_mosaic.version = 11 : i64} {
  func.func @dqn_kernel(%arg0: i32, %arg1: memref<8x16xf32, #tpu.memory_space<vmem>>, %arg2: memref<16x128xf32, #tpu.memory_space<vmem>>, %arg3: memref<1x128xf32, #tpu.memory_space<vmem>>, %arg4: memref<128x128xf32, #tpu.memory_space<vmem>>, %arg5: memref<1x128xf32, #tpu.memory_space<vmem>>, %arg6: memref<128x16xf32, #tpu.memory_space<vmem>>, %arg7: memref<1x16xf32, #tpu.memory_space<vmem>>, %arg8: memref<8x16xf32, #tpu.memory_space<vmem>>) attributes {dimension_semantics = [#tpu.dimension_semantics<parallel>], iteration_bounds = array<i64: 1>, scalar_prefetch = 0 : i64, scratch_operands = 0 : i64, tpu.core_type = #tpu.core_type<tc>, window_params = [{transform_indices = @transform_0, window_bounds = array<i64: 8, 16>}, {pipeline_mode = #tpu.pipeline_mode<synchronous>, transform_indices = @transform_1, window_bounds = array<i64: 16, 128>}, {pipeline_mode = #tpu.pipeline_mode<synchronous>, transform_indices = @transform_2, window_bounds = array<i64: 1, 128>}, {pipeline_mode = #tpu.pipeline_mode<synchronous>, transform_indices = @transform_3, window_bounds = array<i64: 128, 128>}, {pipeline_mode = #tpu.pipeline_mode<synchronous>, transform_indices = @transform_4, window_bounds = array<i64: 1, 128>}, {pipeline_mode = #tpu.pipeline_mode<synchronous>, transform_indices = @transform_5, window_bounds = array<i64: 128, 16>}, {pipeline_mode = #tpu.pipeline_mode<synchronous>, transform_indices = @transform_6, window_bounds = array<i64: 1, 16>}, {transform_indices = @transform_7, window_bounds = array<i64: 8, 16>}]} {
    %c0 = arith.constant 0 : index
    %c0_0 = arith.constant 0 : index
    %0 = vector.load %arg1[%c0, %c0_0] : memref<8x16xf32, #tpu.memory_space<vmem>>, vector<8x16xf32>
    %c0_1 = arith.constant 0 : index
    %c0_2 = arith.constant 0 : index
    %1 = vector.load %arg2[%c0_1, %c0_2] : memref<16x128xf32, #tpu.memory_space<vmem>>, vector<16x128xf32>
    %cst = arith.constant dense<0.000000e+00> : vector<8x128xf32>
    %2 = tpu.matmul %0, %1, %cst {dimension_numbers = #tpu.dot_dimension_numbers<[1], [0], [0], [1], [0, 0, 1, 1], [], []>} : vector<8x16xf32>, vector<16x128xf32>, vector<8x128xf32> -> vector<8x128xf32>
    %c0_3 = arith.constant 0 : index
    %c0_4 = arith.constant 0 : index
    %3 = vector.load %arg3[%c0_3, %c0_4] : memref<1x128xf32, #tpu.memory_space<vmem>>, vector<1x128xf32>
    %4 = vector.broadcast %3 : vector<1x128xf32> to vector<8x128xf32>
    %5 = arith.addf %2, %4 : vector<8x128xf32>
    %cst_5 = arith.constant 0.000000e+00 : f32
    %6 = vector.broadcast %cst_5 : f32 to vector<8x128xf32>
    %7 = arith.maximumf %5, %6 : vector<8x128xf32>
    %c0_6 = arith.constant 0 : index
    %c0_7 = arith.constant 0 : index
    %8 = vector.load %arg4[%c0_6, %c0_7] : memref<128x128xf32, #tpu.memory_space<vmem>>, vector<128x128xf32>
    %cst_8 = arith.constant dense<0.000000e+00> : vector<8x128xf32>
    %9 = tpu.matmul %7, %8, %cst_8 {dimension_numbers = #tpu.dot_dimension_numbers<[1], [0], [0], [1], [0, 0, 1, 1], [], []>} : vector<8x128xf32>, vector<128x128xf32>, vector<8x128xf32> -> vector<8x128xf32>
    %c0_9 = arith.constant 0 : index
    %c0_10 = arith.constant 0 : index
    %10 = vector.load %arg5[%c0_9, %c0_10] : memref<1x128xf32, #tpu.memory_space<vmem>>, vector<1x128xf32>
    %11 = vector.broadcast %10 : vector<1x128xf32> to vector<8x128xf32>
    %12 = arith.addf %9, %11 : vector<8x128xf32>
    %cst_11 = arith.constant 0.000000e+00 : f32
    %13 = vector.broadcast %cst_11 : f32 to vector<8x128xf32>
    %14 = arith.maximumf %12, %13 : vector<8x128xf32>
    %c0_12 = arith.constant 0 : index
    %c0_13 = arith.constant 0 : index
    %15 = vector.load %arg6[%c0_12, %c0_13] : memref<128x16xf32, #tpu.memory_space<vmem>>, vector<128x16xf32>
    %cst_14 = arith.constant dense<0.000000e+00> : vector<8x16xf32>
    %16 = tpu.matmul %14, %15, %cst_14 {dimension_numbers = #tpu.dot_dimension_numbers<[1], [0], [0], [1], [0, 0, 1, 1], [], []>} : vector<8x128xf32>, vector<128x16xf32>, vector<8x16xf32> -> vector<8x16xf32>
    %c0_15 = arith.constant 0 : index
    %c0_16 = arith.constant 0 : index
    %17 = vector.load %arg7[%c0_15, %c0_16] : memref<1x16xf32, #tpu.memory_space<vmem>>, vector<1x16xf32>
    %18 = vector.broadcast %17 : vector<1x16xf32> to vector<8x16xf32>
    %19 = arith.addf %16, %18 : vector<8x16xf32>
    %c0_17 = arith.constant 0 : index
    %c0_18 = arith.constant 0 : index
    %20 = vector.load %arg8[%c0_17, %c0_18] : memref<8x16xf32, #tpu.memory_space<vmem>>, vector<8x16xf32>
    tpu.vector_store %arg8[%c0_17, %c0_18], %19 {strides = array<i32>} : memref<8x16xf32, #tpu.memory_space<vmem>>, vector<8x16xf32>,
    return
  }
  func.func @transform_0(%arg0: i32) -> (i32, i32) {
    %c0_i32 = arith.constant 0 : i32
    %c0_i32_0 = arith.constant 0 : i32
    return %arg0, %c0_i32 : i32, i32
  }
  func.func @transform_1(%arg0: i32) -> (i32, i32) {
    %c0_i32 = arith.constant 0 : i32
    %c0_i32_0 = arith.constant 0 : i32
    %c0_i32_1 = arith.constant 0 : i32
    return %c0_i32, %c0_i32_0 : i32, i32
  }
  func.func @transform_2(%arg0: i32) -> (i32, i32) {
    %c0_i32 = arith.constant 0 : i32
    %c0_i32_0 = arith.constant 0 : i32
    %c0_i32_1 = arith.constant 0 : i32
    return %c0_i32, %c0_i32_0 : i32, i32
  }
  func.func @transform_3(%arg0: i32) -> (i32, i32) {
    %c0_i32 = arith.constant 0 : i32
    %c0_i32_0 = arith.constant 0 : i32
    %c0_i32_1 = arith.constant 0 : i32
    return %c0_i32, %c0_i32_0 : i32, i32
  }
  func.func @transform_4(%arg0: i32) -> (i32, i32) {
    %c0_i32 = arith.constant 0 : i32
    %c0_i32_0 = arith.constant 0 : i32
    %c0_i32_1 = arith.constant 0 : i32
    return %c0_i32, %c0_i32_0 : i32, i32
  }
  func.func @transform_5(%arg0: i32) -> (i32, i32) {
    %c0_i32 = arith.constant 0 : i32
    %c0_i32_0 = arith.constant 0 : i32
    %c0_i32_1 = arith.constant 0 : i32
    return %c0_i32, %c0_i32_0 : i32, i32
  }
  func.func @transform_6(%arg0: i32) -> (i32, i32) {
    %c0_i32 = arith.constant 0 : i32
    %c0_i32_0 = arith.constant 0 : i32
    %c0_i32_1 = arith.constant 0 : i32
    return %c0_i32, %c0_i32_0 : i32, i32
  }
  func.func @transform_7(%arg0: i32) -> (i32, i32) {
    %c0_i32 = arith.constant 0 : i32
    %c0_i32_0 = arith.constant 0 : i32
    return %arg0, %c0_i32 : i32, i32
  }
}

</mosaic_0001>

<bundles_post_ra>
// kernel: dqn_forward.1
= control target key start
LH: loop header
LB: loop body
LE: loop exit
PB: predicated region body
PF: predicated region fallthrough
CT: control target
= control target key end

     0   :  { %12 = vsyncpa [#allocation3], 0  ;;  %s751_s0 = inlined_call_operand.hbm [shape: f32[8,16], index: 0, kind: input, shape index: {}]   ;;  %s752_s1 = inlined_call_operand.vmem [shape: f32[16,128], index: 1, kind: input, shape index: {}]   ;;  %s753_s2 = inlined_call_operand.vmem [shape: f32[1,128], index: 2, kind: input, shape index: {}]   ;;  %s754_s3 = inlined_call_operand.vmem [shape: f32[128,128], index: 3, kind: input, shape index: {}]   ;;  %s755_s4 = inlined_call_operand.vmem [shape: f32[1,128], index: 4, kind: input, shape index: {}]   ;;  %s756_s5 = inlined_call_operand.vmem [shape: f32[128,16], index: 5, kind: input, shape index: {}]   ;;  %s757_s6 = inlined_call_operand.vmem [shape: f32[1,16], index: 6, kind: input, shape index: {}]   ;;  %s758_s7 = inlined_call_operand.hbm [shape: f32[8,16], index: 7, kind: output, shape index: {}]  }
   0x1   :  { %13 = vsyncpa [#allocation4], 0  ;;  %s549_s24 = smov [#allocation2]   ;;  %s501_s28 = scalar_lea.hbm %s751_s0, 128 }
   0x2   :  { %s20_s25 = sshll.u32 %s549_s24, 4  ;;  %p502_p0 = scmp.ne.s32.totalorder %s751_s0, %s501_s28  ;;  %s21_s25 = int_to_ptr.vmem [resolvable:$true] %s20_s25 }
   0x3   :  { %p505_p1 = scmp.lt.u32.totalorder %s501_s28, %s751_s0 }
   0x5   :  { %p507_p2 = pnand %p505_p1, %p502_p0 }
   0x7   :  { %510 = shalt.err (!%p507_p2)
}
   0x8   :  { %s511_s10 = scalar_lea.vmem %s21_s25, 128  ;;  %p516_p4 = scmp.lt.s32.totalorder %s21_s25, %s21_s25 }
   0x9   :  { %p512_p3 = scmp.ne.s32.totalorder %s21_s25, %s511_s10  ;;  %p517_p5 = scmp.lt.s32.totalorder %s511_s10, %s511_s10 }
   0xb   :  { %p518_p6 = por %p517_p5, %p516_p4 }
   0xd   :  { %p519_p7 = pnand %p518_p6, %p512_p3 }
   0xf   :  { %522 = shalt.err (!%p519_p7)
}
  0x10   :  { %23 = dma.hbm_to_vmem [thread:$0]  %s751_s0, 128, %s21_s25, [#allocation3]  }
  0x11   :  { %545 = dma.done.wait [#allocation3], 128  }
  0x12   :  { %546 = vsyncadd [#allocation3], 4294967168  ;;  %v550_v0 = vmov 0.0|0.0   ;;  %vm551_vm0 = vmmov 0   ;;  %v552_v1 = vmov 0.0   ;;  %v40_v2 = vld [vmem:[%s752_s1] sm:$0xff] }
  0x13   :  { %445 = vmatprep.subr.bf16.mxu0 %v550_v0  ;;  %372 = vmatprep.mubr.msk.f32.mxu0 %vm551_vm0, %v552_v1  ;;  %v41_v3 = vld [vmem:[%s752_s1 + $0x8] sm:$0xff]  ;;  %v124_v5 = vld [vmem:[%s754_s3] sm:$0xff]  ;;  %v126_v7 = vld [vmem:[%s754_s3 + $0x10] sm:$0xff]  ;;  %vm49_vm1 = vcmask 130048   ;;  %s553_s9 = smov [#allocation5]  }
  0x14   :  { %448 = vmatprep.subr.bf16.mxu1 %v550_v0  ;;  %407 = vmatprep.mubr.msk.f32.mxu1 %vm551_vm0, %v552_v1  ;;  %v446_v4 = vpack.c.bf16 %v41_v3, %v40_v2  ;;  %v125_v6 = vld [vmem:[%s754_s3 + $0x8] sm:$0xff]  ;;  %v127_v9 = vld [vmem:[%s754_s3 + $0x18] sm:$0xff]  ;;  %v39_v10 = vld [vmem:[#allocation2] sm:$0xff]  ;;  %s318_s10 = sshll.u32 %s553_s9, 4  ;;  %s319_s10 = int_to_ptr.vmem [resolvable:$true] %s318_s10 }
  0x15   :  { %v449_v8 = vpack.c.bf16 %v125_v6, %v124_v5  ;;  %v452_v11 = vpack.c.bf16 %v127_v9, %v126_v7  ;;  %v128_v12 = vld [vmem:[%s754_s3 + $0x20] sm:$0xff]  ;;  %v129_v13 = vld [vmem:[%s754_s3 + $0x28] sm:$0xff]  ;;  %v130_v15 = vld [vmem:[%s754_s3 + $0x30] sm:$0xff]  ;;  %p528_p9 = scmp.lt.s32.totalorder %s319_s10, %s319_s10 }
  0x16   :  { %447 = vmatpush3.bf16.msra.mxu0 %v446_v4  ;;  %v455_v14 = vpack.c.bf16 %v129_v13, %v128_v12  ;;  %v131_v16 = vld [vmem:[%s754_s3 + $0x38] sm:$0xff]  ;;  %v132_v18 = vld [vmem:[%s754_s3 + $0x40] sm:$0xff]  ;;  %v133_v19 = vld [vmem:[%s754_s3 + $0x48] sm:$0xff] }
  0x17   :  { %450 = vmatpush3.bf16.msra.mxu1 %v449_v8  ;;  %472 = vmatprep.subr.bf16.mxu0 %v550_v0  ;;  %v458_v17 = vpack.c.bf16 %v131_v16, %v130_v15  ;;  %v461_v20 = vpack.c.bf16 %v133_v19, %v132_v18  ;;  %v134_v21 = vld [vmem:[%s754_s3 + $0x50] sm:$0xff]  ;;  %v135_v22 = vld [vmem:[%s754_s3 + $0x58] sm:$0xff]  ;;  %v136_v24 = vld [vmem:[%s754_s3 + $0x60] sm:$0xff] }
  0x18   :  { %451 = vmatprep.subr.bf16.mxu1 %v550_v0  ;;  %v464_v23 = vpack.c.bf16 %v135_v22, %v134_v21  ;;  %v137_v25 = vld [vmem:[%s754_s3 + $0x68] sm:$0xff]  ;;  %v138_v27 = vld [vmem:[%s754_s3 + $0x70] sm:$0xff]  ;;  %v139_v28 = vld [vmem:[%s754_s3 + $0x78] sm:$0xff] }
  0x19   :  { %373 = vmatmul.mubr.msk.f32.vlgmr.msra.gmra.mrb[0].mxu0 %vm49_vm1, %v39_v10  ;;  %v467_v26 = vpack.c.bf16 %v137_v25, %v136_v24  ;;  %v470_v29 = vpack.c.bf16 %v139_v28, %v138_v27  ;;  %v218_v30 = vld [vmem:[%s756_s5] sm:$0xff]  ;;  %v219_v31 = vld [vmem:[%s756_s5 + $0x8] sm:$0xff]  ;;  %v220_v32 = vld [vmem:[%s756_s5 + $0x10] sm:$0xff] }
  0x1a   :  { %442 = vmatprep.mubr.msk.f32.mxu0 %vm551_vm0, %v552_v1  ;;  %v473_v33 = vpack.c.bf16 %v219_v31, %v218_v30  ;;  %v221_v34 = vld [vmem:[%s756_s5 + $0x18] sm:$0xff]  ;;  %v222_v36 = vld [vmem:[%s756_s5 + $0x20] sm:$0xff]  ;;  %v223_v37 = vld [vmem:[%s756_s5 + $0x28] sm:$0xff] }
  0x1b   :  { %453 = vmatpush3.bf16.msra.mxu1 %v452_v11  ;;  %v476_v35 = vpack.c.bf16 %v221_v34, %v220_v32  ;;  %v479_v38 = vpack.c.bf16 %v223_v37, %v222_v36  ;;  %v224_v39 = vld [vmem:[%s756_s5 + $0x30] sm:$0xff]  ;;  %v225_v40 = vld [vmem:[%s756_s5 + $0x38] sm:$0xff]  ;;  %v226_v42 = vld [vmem:[%s756_s5 + $0x40] sm:$0xff] }
  0x1c   :  { %454 = vmatprep.subr.bf16.mxu1 %v550_v0  ;;  %474 = vmatpush3.bf16.msra.mxu0 %v473_v33  ;;  %v482_v41 = vpack.c.bf16 %v225_v40, %v224_v39  ;;  %v227_v43 = vld [vmem:[%s756_s5 + $0x48] sm:$0xff]  ;;  %v228_v45 = vld [vmem:[%s756_s5 + $0x50] sm:$0xff]  ;;  %v229_v46 = vld [vmem:[%s756_s5 + $0x58] sm:$0xff] }
  0x1d   :  { %475 = vmatprep.subr.bf16.mxu0 %v550_v0  ;;  %v485_v44 = vpack.c.bf16 %v227_v43, %v226_v42  ;;  %v488_v47 = vpack.c.bf16 %v229_v46, %v228_v45  ;;  %v230_v48 = vld [vmem:[%s756_s5 + $0x60] sm:$0xff]  ;;  %v231_v49 = vld [vmem:[%s756_s5 + $0x68] sm:$0xff]  ;;  %v232_v56 = vld [vmem:[%s756_s5 + $0x70] sm:$0xff] }
  0x1e   :  { %v491_v50 = vpack.c.bf16 %v231_v49, %v230_v48  ;;  %v327_v51 = vld [vmem:[%s753_s2] ss:$0 sm:$0xff]  ;;  %v233_v57 = vld [vmem:[%s756_s5 + $0x78] sm:$0xff]  ;;  %s523_s5 = scalar_lea.vmem %s319_s10, 128 }
  0x1f   :  { %456 = vmatpush3.bf16.msra.mxu1 %v455_v14  ;;  %v494_v58 = vpack.c.bf16 %v233_v57, %v232_v56  ;;  %v329_v59 = vld [vmem:[%s755_s4] ss:$0 sm:$0xff]  ;;  %p524_p8 = scmp.ne.s32.totalorder %s319_s10, %s523_s5  ;;  %p529_p10 = scmp.lt.s32.totalorder %s523_s5, %s523_s5 }
  0x20   :  { %457 = vmatprep.subr.bf16.mxu1 %v550_v0  ;;  %477 = vmatpush3.bf16.msra.mxu0 %v476_v35 }
  0x21   :  { %478 = vmatprep.subr.bf16.mxu0 %v550_v0  ;;  %p530_p11 = por %p529_p10, %p528_p9 }
  0x23   :  { %459 = vmatpush3.bf16.msra.mxu1 %v458_v17  ;;  %p531_p12 = pnand %p530_p11, %p524_p8 }
  0x24   :  { %460 = vmatprep.subr.bf16.mxu1 %v550_v0  ;;  %480 = vmatpush3.bf16.msra.mxu0 %v479_v38 }
  0x25   :  { %481 = vmatprep.subr.bf16.mxu0 %v550_v0 }
  0x27   :  { %462 = vmatpush3.bf16.msra.mxu1 %v461_v20 }
  0x28   :  { %463 = vmatprep.subr.bf16.mxu1 %v550_v0  ;;  %483 = vmatpush3.bf16.msra.mxu0 %v482_v41 }
  0x29   :  { %484 = vmatprep.subr.bf16.mxu0 %v550_v0 }
  0x2b   :  { %465 = vmatpush3.bf16.msra.mxu1 %v464_v23 }
  0x2c   :  { %466 = vmatprep.subr.bf16.mxu1 %v550_v0  ;;  %486 = vmatpush3.bf16.msra.mxu0 %v485_v44 }
  0x2d   :  { %487 = vmatprep.subr.bf16.mxu0 %v550_v0 }
  0x2f   :  { %468 = vmatpush3.bf16.msra.mxu1 %v467_v26 }
  0x30   :  { %469 = vmatprep.subr.bf16.mxu1 %v550_v0  ;;  %489 = vmatpush3.bf16.msra.mxu0 %v488_v47 }
  0x31   :  { %490 = vmatprep.subr.bf16.mxu0 %v550_v0 }
  0x33   :  { %471 = vmatpush3.bf16.msra.mxu1 %v470_v29 }
  0x34   :  { %492 = vmatpush3.bf16.msra.mxu0 %v491_v50 }
  0x35   :  { %493 = vmatprep.subr.bf16.mxu0 %v550_v0  ;;  %v330_v0 = vld [vmem:[%s757_s6] ss:$0 sm:$0xff] }
  0x38   :  { %495 = vmatpush3.bf16.msra.mxu0 %v494_v58 }
  0xec   :  { %v119_v52 = vpop.f32.mrb[0].mxu0 }
  0xed   :  { %v120_v53 = vadd.f32 %v327_v51, %v119_v52  ;;  %v374_v54 = vpop.f32.mrb[1].mxu0 }
  0xef   :  { %v123_v55 = vmax.f32 %v120_v53, 0.0 }
  0xf1   :  { %408 = vmatmul.mubr.f32.vlgmr.msra.gmra.mrb[0].mxu1 %v123_v55 }
 0x1c4   :  { %v213_v60 = vpop.f32.mrb[0].mxu1 }
 0x1c5   :  { %v214_v61 = vadd.f32 %v329_v59, %v213_v60  ;;  %v409_v62 = vpop.f32.mrb[1].mxu1 }
 0x1c7   :  { %v217_v63 = vmax.f32 %v214_v61, 0.0 }
 0x1c9   :  { %443 = vmatmul.mubr.f32.vlgmr.msra.gmra.mrb[2].mxu0 %v217_v63 }
 0x29c   :  { %v307_v1 = vpop.f32.mrb[2].mxu0 }
 0x29d   :  { %v308_v2 = vadd.f32 %v330_v0, %v307_v1  ;;  %v444_v3 = vpop.f32.mrb[3].mxu0 }
 0x29f   :  { %311 = vst.msk [vmem:[#allocation5] sm:$0xff] %vm49_vm1, %v308_v2 }
 0x2a0   :  { %534 = shalt.err (!%p531_p12)
}
 0x2a1   :  { %s535_s12 = scalar_lea.hbm %s758_s7, 128 }
 0x2a2   :  { %p536_p13 = scmp.ne.s32.totalorder %s758_s7, %s535_s12  ;;  %p539_p0 = scmp.lt.u32.totalorder %s535_s12, %s758_s7 }
 0x2a4   :  { %p541_p1 = pnand %p539_p0, %p536_p13 }
 0x2a6   :  { %544 = shalt.err (!%p541_p1)
}
 0x2a7   :  { %321 = dma.vmem_to_hbm [thread:$0]  %s319_s10, 128, %s758_s7, [#allocation4]  }
 0x2a8   :  { %547 = dma.done.wait [#allocation4], 128  }
 0x2a9   :  { %548 = vsyncadd [#allocation4], 4294967168 }
 0x2aa   :  { %325 = vsyncpa [#allocation3], 1 }
 0x2ab   :  { %326 = vsyncpa [#allocation4], 1 }

</bundles_post_ra>
